<compile_context>
chip_gen: v6e
topology: v6e:2x2x1
jax: 0.10.0
libtpu: 0.0.40
codegen_flags: <defaults>
</compile_context>

<pallas_src>
import functools
import math

import jax
import jax.numpy as jnp
from jax.experimental import pallas as pl
from jax.experimental.pallas import tpu as pltpu

_BN_EPS = 1e-5


def _round_up(x, m):
    return ((x + m - 1) // m) * m


# ---------------------------------------------------------------------------
# Kernel
# ---------------------------------------------------------------------------
def _fc_kernel(x_ref, w1_ref, w2_ref, w3_ref, b_ref, o_ref, *, bf16_epilogue):
    """Fused row-packed 3-layer MLP (BN pre-folded):
    Linear -> ReLU -> Linear -> ReLU -> Linear -> Sigmoid for one batch tile.

    Shapes (P = pack factor, TBP = packed rows per tile):
      x_ref : (TBP, 32*P) f32     w1_ref: (32*P, 64*P) bf16 (block-diagonal)
      o_ref : (TBP, 16*P) bf16    w2_ref: (64*P, 32*P) bf16 (block-diagonal)
      b_ref : (3, 64*P)   f32     w3_ref: (32*P, 16*P) bf16 (block-diagonal)
    """
    n1 = w1_ref.shape[1]
    n2 = w2_ref.shape[1]
    n3 = w3_ref.shape[1]

    x = x_ref[...].astype(jnp.bfloat16)        # cast in-kernel, not in wrapper

    b1 = b_ref[0:1, :n1]
    b2 = b_ref[1:2, :n2]
    b3 = b_ref[2:3, :n3]

    # Layer 1: Linear (BN folded in) + ReLU.  Dropout is identity in eval mode.
    h = jnp.dot(x, w1_ref[...], preferred_element_type=jnp.float32)
    if bf16_epilogue:                          # v6e / v7x: bf16 VALU
        h = jnp.maximum(h.astype(jnp.bfloat16) + b1.astype(jnp.bfloat16), 0.0)
    else:                                      # v5e: keep epilogue in f32
        h = jnp.maximum(h + b1, 0.0).astype(jnp.bfloat16)

    # Layer 2: Linear (BN folded in) + ReLU.
    h = jnp.dot(h, w2_ref[...], preferred_element_type=jnp.float32)
    if bf16_epilogue:
        h = jnp.maximum(h.astype(jnp.bfloat16) + b2.astype(jnp.bfloat16), 0.0)
    else:
        h = jnp.maximum(h + b2, 0.0).astype(jnp.bfloat16)

    # Layer 3: Linear + Sigmoid (tanh form -> EUP slot, overflow-free).
    h = jnp.dot(h, w3_ref[...], preferred_element_type=jnp.float32) + b3
    o_ref[...] = (0.5 * (jnp.tanh(0.5 * h) + 1.0)).astype(o_ref.dtype)


# ---------------------------------------------------------------------------
# Per-generation tuning + tiling
# ---------------------------------------------------------------------------
def _chip_config():
    """Per-TPU-generation knobs (falls back to conservative defaults)."""
    kind = ""
    try:
        kind = jax.devices()[0].device_kind.lower()
    except Exception:
        pass
    if "v7" in kind or "tpu7" in kind:
        # 64 MiB VMEM / TC, 2 TensorCores, 3.2 TB/s HBM: smaller tile, >=2 steps.
        return dict(pack=4, tile_rows=16384, vmem=48 * 1024 * 1024,
                    min_steps=2, bf16_epilogue=True)
    if "v6" in kind:
        # 128 MiB VMEM, bf16 VALU, 918 TF/s MXU -> fully lane-dense pack=8.
        return dict(pack=8, tile_rows=32768, vmem=64 * 1024 * 1024,
                    min_steps=1, bf16_epilogue=True)
    if "v5" in kind and ("lite" in kind or "5e" in kind):
        # 128 MiB VMEM, no bf16 VALU/EUP, 197 TF/s MXU -> pack=4 stays HBM-bound.
        return dict(pack=4, tile_rows=32768, vmem=64 * 1024 * 1024,
                    min_steps=1, bf16_epilogue=False)
    # Unknown / older generation: conservative settings.
    return dict(pack=4, tile_rows=8192, vmem=32 * 1024 * 1024,
                min_steps=1, bf16_epilogue=False)


def _choose_tile(packed_rows, tile_target, min_steps):
    """Pick (tile_rows, grid_steps) in packed-row units."""
    if packed_rows <= tile_target and (min_steps <= 1 or packed_rows < 256):
        return max(packed_rows, 1), 1          # single full-array block
    steps = max(min_steps, pl.cdiv(packed_rows, tile_target))
    tile = _round_up(pl.cdiv(packed_rows, steps), 128)
    return tile, pl.cdiv(packed_rows, tile)


# ---------------------------------------------------------------------------
# Parameter prep (BN fold + block-diagonal row packing)
# ---------------------------------------------------------------------------
def fold_and_pack_params(params, pack):
    """Fold eval-mode BatchNorm into the Linears, expand the weights to
    block-diagonal `pack` form (so `pack` consecutive batch rows are processed
    as one lane-dense row) and pack the biases into one f32 slab."""
    s1 = params["g1"] * jax.lax.rsqrt(params["v1"] + _BN_EPS)          # (1, 64)
    s2 = params["g2"] * jax.lax.rsqrt(params["v2"] + _BN_EPS)          # (1, 32)
    w1 = params["w1"] * s1                                             # (32, 64)
    w2 = params["w2"] * s2                                             # (64, 32)
    w3 = params["w3"]                                                  # (32, 16)
    b1 = (params["b1"] - params["m1"]) * s1 + params["be1"]            # (1, 64)
    b2 = (params["b2"] - params["m2"]) * s2 + params["be2"]            # (1, 32)
    b3 = params["b3"]                                                  # (1, 16)

    eye = jnp.eye(pack, dtype=jnp.float32)
    w1p = jnp.kron(eye, w1).astype(jnp.bfloat16)     # (32P, 64P), block diag
    w2p = jnp.kron(eye, w2).astype(jnp.bfloat16)     # (64P, 32P)
    w3p = jnp.kron(eye, w3).astype(jnp.bfloat16)     # (32P, 16P)

    bpack = jnp.zeros((3, 64 * pack), jnp.float32)
    bpack = bpack.at[0, : 64 * pack].set(jnp.tile(b1[0], pack))
    bpack = bpack.at[1, : 32 * pack].set(jnp.tile(b2[0], pack))
    bpack = bpack.at[2, : 16 * pack].set(jnp.tile(b3[0], pack))
    return w1p, w2p, w3p, bpack


# ---------------------------------------------------------------------------
# Wrapper
# ---------------------------------------------------------------------------
def fully_connected_forward(x, params):
    """x: [batch, input_size] float32 -> [batch, hidden[-1]] bfloat16 scores."""
    batch, in_dim = x.shape
    cfg = _chip_config()

    # Row-pack factor: `pack` consecutive batch rows become one lane-dense row
    # (free row-major reshape of x / out in HBM).  Fall back to the largest
    # power of two dividing the batch.
    pack = cfg["pack"]
    while pack > 1 and batch % pack:
        pack //= 2

    w1, w2, w3, bpack = fold_and_pack_params(params, pack)
    out_dim = params["w3"].shape[1]

    packed_rows = batch // pack
    xp = x.reshape(packed_rows, in_dim * pack)           # free row-major view

    tile_target = max(128, cfg["tile_rows"] // pack)
    tbp, steps = _choose_tile(packed_rows, tile_target, cfg["min_steps"])

    rows_padded = steps * tbp
    flops = 2 * rows_padded * (w1.shape[0] * w1.shape[1]
                               + w2.shape[0] * w2.shape[1]
                               + w3.shape[0] * w3.shape[1])
    bytes_accessed = (packed_rows * in_dim * pack * 4            # x  (f32 read)
                      + packed_rows * out_dim * pack * 2         # out (bf16 write)
                      + (w1.size + w2.size + w3.size) * 2 + bpack.size * 4)

    out = pl.pallas_call(
        functools.partial(_fc_kernel, bf16_epilogue=cfg["bf16_epilogue"]),
        out_shape=jax.ShapeDtypeStruct((packed_rows, out_dim * pack), jnp.bfloat16),
        grid_spec=pltpu.PrefetchScalarGridSpec(
            num_scalar_prefetch=0,
            grid=(steps,),
            in_specs=[
                pl.BlockSpec((tbp, in_dim * pack), lambda i: (i, 0)),  # x: tiled
                pl.BlockSpec(w1.shape, lambda i: (0, 0)),   # weights / biases:
                pl.BlockSpec(w2.shape, lambda i: (0, 0)),   #  constant index_map
                pl.BlockSpec(w3.shape, lambda i: (0, 0)),   #  -> VMEM-resident
                pl.BlockSpec(bpack.shape, lambda i: (0, 0)),
            ],
            out_specs=pl.BlockSpec((tbp, out_dim * pack), lambda i: (i, 0)),
        ),
        compiler_params=pltpu.CompilerParams(
            dimension_semantics=("parallel",),
            vmem_limit_bytes=cfg["vmem"],
        ),
        cost_estimate=pl.CostEstimate(
            flops=flops,
            transcendentals=rows_padded * out_dim * pack,
            bytes_accessed=bytes_accessed,
        ),
    )(xp, w1, w2, w3, bpack)

    # Free row-major un-pack back to [batch, out_dim]; no slicing / padding.
    return out.reshape(batch, out_dim)


# ---------------------------------------------------------------------------
# Parameter init (matches the PyTorch module) + f32 reference
# ---------------------------------------------------------------------------
def _xavier_normal(key, shape_out_in):
    """nn.init.xavier_normal_ for a (out_features, in_features) weight, gain=1."""
    out_f, in_f = shape_out_in
    std = math.sqrt(2.0 / float(in_f + out_f))
    return std * jax.random.normal(key, (out_f, in_f), dtype=jnp.float32)


def init_params(key, input_size, hidden_size):
    """Parameters matching FullyConnectedLayer.__init__ (Linear: xavier_normal
    weight, zero bias).  BatchNorm params / running stats are randomized to
    emulate a trained model and exercise the BN fold; PyTorch defaults
    (gamma=1, beta=0, mean=0, var=1) are equally supported."""
    assert len(hidden_size) == 3
    k1, k2, k3, kb = jax.random.split(key, 4)
    params = {}
    # PyTorch stores (out, in); the kernel wants (in, out) so h = x @ W + b.
    params["w1"] = _xavier_normal(k1, (hidden_size[0], input_size)).T
    params["w2"] = _xavier_normal(k2, (hidden_size[1], hidden_size[0])).T
    params["w3"] = _xavier_normal(k3, (hidden_size[2], hidden_size[1])).T
    params["b1"] = jnp.zeros((1, hidden_size[0]), jnp.float32)
    params["b2"] = jnp.zeros((1, hidden_size[1]), jnp.float32)
    params["b3"] = jnp.zeros((1, hidden_size[2]), jnp.float32)
    kg1, kb1, km1, kv1, kg2, kb2, km2, kv2 = jax.random.split(kb, 8)
    for idx, h, kg, kbe, km, kv in (
        (1, hidden_size[0], kg1, kb1, km1, kv1),
        (2, hidden_size[1], kg2, kb2, km2, kv2),
    ):
        params[f"g{idx}"] = 1.0 + 0.1 * jax.random.normal(kg, (1, h), jnp.float32)
        params[f"be{idx}"] = 0.1 * jax.random.normal(kbe, (1, h), jnp.float32)
        params[f"m{idx}"] = 0.5 * jax.random.normal(km, (1, h), jnp.float32)
        params[f"v{idx}"] = jax.random.uniform(kv, (1, h), jnp.float32, 0.5, 1.5)
    return params


def reference_forward(x, params):
    """Pure-JAX f32 reference (unfused BN, eval mode) for correctness checking."""
    h = x @ params["w1"] + params["b1"]
    h = (h - params["m1"]) / jnp.sqrt(params["v1"] + _BN_EPS) * params["g1"] + params["be1"]
    h = jnp.maximum(h, 0.0)
    h = h @ params["w2"] + params["b2"]
    h = (h - params["m2"]) / jnp.sqrt(params["v2"] + _BN_EPS) * params["g2"] + params["be2"]
    h = jnp.maximum(h, 0.0)
    h = h @ params["w3"] + params["b3"]
    return jax.nn.sigmoid(h)


if __name__ == "__main__":
    input_size = 32
    hidden_size = [64, 32, 16]
    batch = 8

    key = jax.random.PRNGKey(0)
    kx, kp = jax.random.split(key)
    x = jax.random.normal(kx, (batch, input_size), dtype=jnp.float32)
    params = init_params(kp, input_size, hidden_size)

    fwd = jax.jit(fully_connected_forward)
    out = jax.block_until_ready(fwd(x, params))

    ref = reference_forward(x, params)
    assert out.shape == (batch, hidden_size[-1]), out.shape
    # bf16 weights/activations/output with f32 accumulation -> loose tolerance.
    max_err = float(jnp.max(jnp.abs(out.astype(jnp.float32) - ref)))
    assert max_err < 3e-2, max_err

    print("KERNEL_OK")
</pallas_src>

<mosaic_0001>
module attributes {stable_mosaic.version = 11 : i64} {
  func.func @_fc_kernel(%arg0: i32, %arg1: memref<2x128xf32, #tpu.memory_space<vmem>>, %arg2: memref<128x256xbf16, #tpu.memory_space<vmem>>, %arg3: memref<256x128xbf16, #tpu.memory_space<vmem>>, %arg4: memref<128x64xbf16, #tpu.memory_space<vmem>>, %arg5: memref<3x256xf32, #tpu.memory_space<vmem>>, %arg6: memref<2x64xbf16, #tpu.memory_space<vmem>>) attributes {dimension_semantics = [#tpu.dimension_semantics<parallel>], iteration_bounds = array<i64: 1>, scalar_prefetch = 0 : i64, scratch_operands = 0 : i64, tpu.core_type = #tpu.core_type<tc>, window_params = [{transform_indices = @transform_0, window_bounds = array<i64: 2, 128>}, {pipeline_mode = #tpu.pipeline_mode<synchronous>, transform_indices = @transform_1, window_bounds = array<i64: 128, 256>}, {pipeline_mode = #tpu.pipeline_mode<synchronous>, transform_indices = @transform_2, window_bounds = array<i64: 256, 128>}, {pipeline_mode = #tpu.pipeline_mode<synchronous>, transform_indices = @transform_3, window_bounds = array<i64: 128, 64>}, {pipeline_mode = #tpu.pipeline_mode<synchronous>, transform_indices = @transform_4, window_bounds = array<i64: 3, 256>}, {transform_indices = @transform_5, window_bounds = array<i64: 2, 64>}]} {
    %c0 = arith.constant 0 : index
    %c0_0 = arith.constant 0 : index
    %0 = vector.load %arg1[%c0, %c0_0] : memref<2x128xf32, #tpu.memory_space<vmem>>, vector<2x128xf32>
    %1 = arith.truncf %0 : vector<2x128xf32> to vector<2x128xbf16>
    %c0_1 = arith.constant 0 : index
    %c0_2 = arith.constant 0 : index
    %2 = vector.load %arg5[%c0_1, %c0_2] : memref<3x256xf32, #tpu.memory_space<vmem>>, vector<1x256xf32>
    %c1 = arith.constant 1 : index
    %c0_3 = arith.constant 0 : index
    %3 = vector.load %arg5[%c1, %c0_3] : memref<3x256xf32, #tpu.memory_space<vmem>>, vector<1x128xf32>
    %c2 = arith.constant 2 : index
    %c0_4 = arith.constant 0 : index
    %4 = vector.load %arg5[%c2, %c0_4] : memref<3x256xf32, #tpu.memory_space<vmem>>, vector<1x64xf32>
    %c0_5 = arith.constant 0 : index
    %c0_6 = arith.constant 0 : index
    %5 = vector.load %arg2[%c0_5, %c0_6] : memref<128x256xbf16, #tpu.memory_space<vmem>>, vector<128x256xbf16>
    %cst = arith.constant dense<0.000000e+00> : vector<2x256xf32>
    %6 = tpu.matmul %1, %5, %cst {dimension_numbers = #tpu.dot_dimension_numbers<[1], [0], [0], [1], [0, 0, 1, 1], [], []>} : vector<2x128xbf16>, vector<128x256xbf16>, vector<2x256xf32> -> vector<2x256xf32>
    %7 = vector.broadcast %2 : vector<1x256xf32> to vector<2x256xf32>
    %8 = arith.addf %6, %7 : vector<2x256xf32>
    %cst_7 = arith.constant 0.000000e+00 : f32
    %9 = vector.broadcast %cst_7 : f32 to vector<2x256xf32>
    %10 = arith.maximumf %8, %9 : vector<2x256xf32>
    %11 = arith.truncf %10 : vector<2x256xf32> to vector<2x256xbf16>
    %c0_8 = arith.constant 0 : index
    %c0_9 = arith.constant 0 : index
    %12 = vector.load %arg3[%c0_8, %c0_9] : memref<256x128xbf16, #tpu.memory_space<vmem>>, vector<256x128xbf16>
    %cst_10 = arith.constant dense<0.000000e+00> : vector<2x128xf32>
    %13 = tpu.matmul %11, %12, %cst_10 {dimension_numbers = #tpu.dot_dimension_numbers<[1], [0], [0], [1], [0, 0, 1, 1], [], []>} : vector<2x256xbf16>, vector<256x128xbf16>, vector<2x128xf32> -> vector<2x128xf32>
    %14 = vector.broadcast %3 : vector<1x128xf32> to vector<2x128xf32>
    %15 = arith.addf %13, %14 : vector<2x128xf32>
    %cst_11 = arith.constant 0.000000e+00 : f32
    %16 = vector.broadcast %cst_11 : f32 to vector<2x128xf32>
    %17 = arith.maximumf %15, %16 : vector<2x128xf32>
    %18 = arith.truncf %17 : vector<2x128xf32> to vector<2x128xbf16>
    %c0_12 = arith.constant 0 : index
    %c0_13 = arith.constant 0 : index
    %19 = vector.load %arg4[%c0_12, %c0_13] : memref<128x64xbf16, #tpu.memory_space<vmem>>, vector<128x64xbf16>
    %cst_14 = arith.constant dense<0.000000e+00> : vector<2x64xf32>
    %20 = tpu.matmul %18, %19, %cst_14 {dimension_numbers = #tpu.dot_dimension_numbers<[1], [0], [0], [1], [0, 0, 1, 1], [], []>} : vector<2x128xbf16>, vector<128x64xbf16>, vector<2x64xf32> -> vector<2x64xf32>
    %21 = vector.broadcast %4 : vector<1x64xf32> to vector<2x64xf32>
    %22 = arith.addf %20, %21 : vector<2x64xf32>
    %cst_15 = arith.constant 5.000000e-01 : f32
    %23 = vector.broadcast %cst_15 : f32 to vector<2x64xf32>
    %24 = arith.mulf %23, %22 : vector<2x64xf32>
    %25 = math.tanh %24 : vector<2x64xf32>
    %cst_16 = arith.constant 1.000000e+00 : f32
    %26 = vector.broadcast %cst_16 : f32 to vector<2x64xf32>
    %27 = arith.addf %25, %26 : vector<2x64xf32>
    %cst_17 = arith.constant 5.000000e-01 : f32
    %28 = vector.broadcast %cst_17 : f32 to vector<2x64xf32>
    %29 = arith.mulf %28, %27 : vector<2x64xf32>
    %30 = arith.truncf %29 : vector<2x64xf32> to vector<2x64xbf16>
    %c0_18 = arith.constant 0 : index
    %c0_19 = arith.constant 0 : index
    %31 = vector.load %arg6[%c0_18, %c0_19] : memref<2x64xbf16, #tpu.memory_space<vmem>>, vector<2x64xbf16>
    tpu.vector_store %arg6[%c0_18, %c0_19], %30 {strides = array<i32>} : memref<2x64xbf16, #tpu.memory_space<vmem>>, vector<2x64xbf16>,
    return
  }
  func.func @transform_0(%arg0: i32) -> (i32, i32) {
    %c0_i32 = arith.constant 0 : i32
    %c0_i32_0 = arith.constant 0 : i32
    return %arg0, %c0_i32 : i32, i32
  }
  func.func @transform_1(%arg0: i32) -> (i32, i32) {
    %c0_i32 = arith.constant 0 : i32
    %c0_i32_0 = arith.constant 0 : i32
    %c0_i32_1 = arith.constant 0 : i32
    return %c0_i32, %c0_i32_0 : i32, i32
  }
  func.func @transform_2(%arg0: i32) -> (i32, i32) {
    %c0_i32 = arith.constant 0 : i32
    %c0_i32_0 = arith.constant 0 : i32
    %c0_i32_1 = arith.constant 0 : i32
    return %c0_i32, %c0_i32_0 : i32, i32
  }
  func.func @transform_3(%arg0: i32) -> (i32, i32) {
    %c0_i32 = arith.constant 0 : i32
    %c0_i32_0 = arith.constant 0 : i32
    %c0_i32_1 = arith.constant 0 : i32
    return %c0_i32, %c0_i32_0 : i32, i32
  }
  func.func @transform_4(%arg0: i32) -> (i32, i32) {
    %c0_i32 = arith.constant 0 : i32
    %c0_i32_0 = arith.constant 0 : i32
    %c0_i32_1 = arith.constant 0 : i32
    return %c0_i32, %c0_i32_0 : i32, i32
  }
  func.func @transform_5(%arg0: i32) -> (i32, i32) {
    %c0_i32 = arith.constant 0 : i32
    %c0_i32_0 = arith.constant 0 : i32
    return %arg0, %c0_i32 : i32, i32
  }
}

</mosaic_0001>

<bundles_post_ra>
// kernel: tile.14
= control target key start
LH: loop header
LB: loop body
LE: loop exit
PB: predicated region body
PF: predicated region fallthrough
CT: control target
= control target key end

     0   :  { %s22_s0 = inlined_call_operand.vmem [shape: f32[64], index: 0, kind: input, shape index: {}]   ;;  %s23_s1 = inlined_call_operand.vmem [shape: f32[4,64], index: 1, kind: output, shape index: {}]  }
   0x1   :  { %v4_v0 = vld [vmem:[%s22_s0] ss:$0 sm:$0xff] }
   0x2   :  { %5 = vst [vmem:[%s23_s1] sm:$0xf] %v4_v0 }

// kernel: tile.18
= control target key start
LH: loop header
LB: loop body
LE: loop exit
PB: predicated region body
PF: predicated region fallthrough
CT: control target
= control target key end

     0   :  { %s22_s0 = inlined_call_operand.vmem [shape: f32[32], index: 0, kind: input, shape index: {}]   ;;  %s23_s1 = inlined_call_operand.vmem [shape: f32[4,32], index: 1, kind: output, shape index: {}]  }
   0x1   :  { %v4_v0 = vld [vmem:[%s22_s0] ss:$0 sm:$0xff] }
   0x2   :  { %5 = vst [vmem:[%s23_s1] sm:$0xf] %v4_v0 }

// kernel: tile.22
= control target key start
LH: loop header
LB: loop body
LE: loop exit
PB: predicated region body
PF: predicated region fallthrough
CT: control target
= control target key end

     0   :  { %s22_s0 = inlined_call_operand.vmem [shape: f32[16], index: 0, kind: input, shape index: {}]   ;;  %s23_s1 = inlined_call_operand.vmem [shape: f32[4,16], index: 1, kind: output, shape index: {}]  }
   0x1   :  { %v4_v0 = vld [vmem:[%s22_s0] ss:$0 sm:$0xff] }
   0x2   :  { %5 = vst [vmem:[%s23_s1] sm:$0xf] %v4_v0 }

// kernel: fully_connected_forward.1
= control target key start
LH: loop header
LB: loop body
LE: loop exit
PB: predicated region body
PF: predicated region fallthrough
CT: control target
= control target key end

     0   :  { %v617_v1 = vmov 0   ;;  %v618_v35 = vmov 0.0   ;;  %v43_v41 = vlaneseq  ;;  %vm619_vm0 = vmmov 0   ;;  %s785_s1 = inlined_call_operand.vmem [shape: bf16[128,256], index: 1, kind: input, shape index: {}]   ;;  %s786_s2 = inlined_call_operand.vmem [shape: bf16[256,128], index: 2, kind: input, shape index: {}]   ;;  %s787_s0 = inlined_call_operand.vmem [shape: f32[2,128], index: 0, kind: input, shape index: {}]   ;;  %s788_s3 = inlined_call_operand.vmem [shape: bf16[128,64], index: 3, kind: input, shape index: {}]   ;;  %s789_s4 = inlined_call_operand.vmem [shape: f32[3,256], index: 4, kind: input, shape index: {}]   ;;  %s790_s5 = inlined_call_operand.vmem [shape: bf16[2,64], index: 5, kind: output, shape index: {}]  }
   0x1   :  { %v567_v0 = vld [vmem:[%s785_s1 + $0x74] ss:$8 sps:$4 sm:$0xff]   ;;  %165 = vmatprep.mubr.bf16.mxu0 %v617_v1  ;;  %v569_v2 = vld [vmem:[%s785_s1 + $0x70] ss:$8 sps:$4 sm:$0xff]   ;;  %v570_v3 = vld [vmem:[%s785_s1 + $0x64] ss:$8 sps:$4 sm:$0xff]  }
   0x2   :  { %133 = vmatprep.subr.bf16.mxu0 %v567_v0  ;;  %v572_v4 = vld [vmem:[%s785_s1 + $0x60] ss:$8 sps:$4 sm:$0xff]   ;;  %v573_v5 = vld [vmem:[%s785_s1 + $0x54] ss:$8 sps:$4 sm:$0xff]   ;;  %v575_v6 = vld [vmem:[%s785_s1 + $0x50] ss:$8 sps:$4 sm:$0xff]  }
   0x3   :  { %134 = vmatpush1.bf16.msra.mxu0 %v569_v2  ;;  %v576_v7 = vld [vmem:[%s785_s1 + $0x44] ss:$8 sps:$4 sm:$0xff]   ;;  %v578_v8 = vld [vmem:[%s785_s1 + $0x40] ss:$8 sps:$4 sm:$0xff]   ;;  %v579_v9 = vld [vmem:[%s785_s1 + $0x34] ss:$8 sps:$4 sm:$0xff]  }
   0x4   :  { %135 = vmatprep.subr.bf16.mxu0 %v570_v3  ;;  %v591_v10 = vld [vmem:[%s786_s2 + $0x78] sm:$0xff]   ;;  %v593_v13 = vld [vmem:[%s786_s2 + $0x70] sm:$0xff]   ;;  %v595_v15 = vld [vmem:[%s786_s2 + $0x68] sm:$0xff]   ;;  %v44_v42 = vshrl.u32 %v43_v41, 7  ;;  %vm465_vm1 = vcmask 516096  }
   0x5   :  { %v592_v11 = vld [vmem:[%s786_s2 + $0x38] sm:$0xff]   ;;  %513 = vmatprep.subr.bf16.mxu1 %v591_v10  ;;  %v594_v14 = vld [vmem:[%s786_s2 + $0x30] sm:$0xff]   ;;  %v582_v16 = vld [vmem:[%s785_s1 + $0x24] ss:$8 sps:$4 sm:$0xff]  }
   0x6   :  { %v581_v12 = vld [vmem:[%s785_s1 + $0x30] ss:$8 sps:$4 sm:$0xff]   ;;  %514 = vmatpush3.bf16.msra.mxu1 %v592_v11  ;;  %v584_v17 = vld [vmem:[%s785_s1 + $0x20] ss:$8 sps:$4 sm:$0xff]   ;;  %v585_v20 = vld [vmem:[%s785_s1 + $0x14] ss:$8 sps:$4 sm:$0xff]  }
   0x7   :  { %136 = vmatpush1.bf16.msra.mxu0 %v572_v4  ;;  %515 = vmatprep.subr.bf16.mxu1 %v593_v13  ;;  %v596_v18 = vld [vmem:[%s786_s2 + $0x28] sm:$0xff]   ;;  %v597_v19 = vld [vmem:[%s786_s2 + $0x60] sm:$0xff]   ;;  %v587_v21 = vld [vmem:[%s785_s1 + $0x10] ss:$8 sps:$4 sm:$0xff]   ;;  %v45_v43 = vsub.s32 0, %v44_v42  ;;  %v49_v45 = vsub.s32 1, %v44_v42 }
   0x8   :  { %137 = vmatprep.subr.bf16.mxu0 %v573_v5  ;;  %v598_v22 = vld [vmem:[%s786_s2 + $0x20] sm:$0xff]   ;;  %v599_v24 = vld [vmem:[%s786_s2 + $0x58] sm:$0xff]   ;;  %v601_v28 = vld [vmem:[%s786_s2 + $0x50] sm:$0xff]  }
   0x9   :  { %v588_v23 = vld [vmem:[%s785_s1 + $0x4] ss:$8 sps:$4 sm:$0xff]   ;;  %v600_v25 = vld [vmem:[%s786_s2 + $0x18] sm:$0xff]   ;;  %v590_v26 = vld [vmem:[%s785_s1] ss:$8 sps:$4 sm:$0xff]  }
   0xa   :  { %516 = vmatpush3.bf16.msra.mxu1 %v594_v14  ;;  %v21_v27 = vld [vmem:[%s787_s0] sm:$0x3]  ;;  %v602_v30 = vld [vmem:[%s786_s2 + $0x10] sm:$0xff]   ;;  %v603_v31 = vld [vmem:[%s786_s2 + $0x48] sm:$0xff]  }
   0xb   :  { %138 = vmatpush1.bf16.msra.mxu0 %v575_v6  ;;  %517 = vmatprep.subr.bf16.mxu1 %v595_v15  ;;  %v22_v29 = vpack.c.bf16 %v21_v27, %v21_v27  ;;  %v604_v32 = vld [vmem:[%s786_s2 + $0x8] sm:$0xff]   ;;  %v605_v33 = vld [vmem:[%s786_s2 + $0x40] sm:$0xff]   ;;  %v607_v36 = vld [vmem:[%s788_s3 + $0x38] sm:$0xff]  }
   0xc   :  { %139 = vmatprep.subr.bf16.mxu0 %v576_v7  ;;  %v606_v34 = vld [vmem:[%s786_s2] sm:$0xff]   ;;  %v608_v37 = vld [vmem:[%s788_s3 + $0x30] sm:$0xff]   ;;  %v609_v38 = vld [vmem:[%s788_s3 + $0x28] sm:$0xff]  }
   0xd   :  { %v610_v39 = vld [vmem:[%s788_s3 + $0x20] sm:$0xff]   ;;  %v611_v40 = vld [vmem:[%s788_s3 + $0x18] sm:$0xff]   ;;  %v612_v58 = vld [vmem:[%s788_s3 + $0x10] sm:$0xff]  }
   0xe   :  { %518 = vmatpush3.bf16.msra.mxu1 %v596_v18  ;;  %v23_v44 = vld [vmem:[%s789_s4] ss:$4 sm:$0x3]  ;;  %v613_v59 = vld [vmem:[%s788_s3 + $0x8] sm:$0xff]   ;;  %v487_v62 = vld [vmem:[%s789_s4 + $0x1] ss:$0 sm:$0xff] }
   0xf   :  { %140 = vmatpush1.bf16.msra.mxu0 %v578_v8  ;;  %519 = vmatprep.subr.bf16.mxu1 %v597_v19  ;;  %v46_v46 = vrot.slane %v23_v44, %v45_v43  ;;  %v50_v47 = vrot.slane %v23_v44, %v49_v45  ;;  %v614_v60 = vld [vmem:[%s788_s3] sm:$0xff]  }
  0x10   :  { %141 = vmatprep.subr.bf16.mxu0 %v579_v9  ;;  %v504_v6 = vld [vmem:[%s789_s4 + $0x2] ss:$0 sm:$0xff] }
  0x12   :  { %520 = vmatpush3.bf16.msra.mxu1 %v598_v22 }
  0x13   :  { %142 = vmatpush1.bf16.msra.mxu0 %v581_v12  ;;  %521 = vmatprep.subr.bf16.mxu1 %v599_v24 }
  0x14   :  { %143 = vmatprep.subr.bf16.mxu0 %v582_v16 }
  0x16   :  { %522 = vmatpush3.bf16.msra.mxu1 %v600_v25 }
  0x17   :  { %144 = vmatpush1.bf16.msra.mxu0 %v584_v17  ;;  %523 = vmatprep.subr.bf16.mxu1 %v601_v28 }
  0x18   :  { %145 = vmatprep.subr.bf16.mxu0 %v585_v20 }
  0x1a   :  { %524 = vmatpush3.bf16.msra.mxu1 %v602_v30 }
  0x1b   :  { %146 = vmatpush1.bf16.msra.mxu0 %v587_v21  ;;  %525 = vmatprep.subr.bf16.mxu1 %v603_v31 }
  0x1c   :  { %147 = vmatprep.subr.bf16.mxu0 %v588_v23 }
  0x1e   :  { %526 = vmatpush3.bf16.msra.mxu1 %v604_v32 }
  0x1f   :  { %148 = vmatpush1.bf16.msra.mxu0 %v590_v26  ;;  %527 = vmatprep.subr.bf16.mxu1 %v605_v33 }
  0x20   :  { %544 = vmatprep.subr.bf16.mxu0 %v618_v35 }
  0x22   :  { %166 = vmatmul.mubr.bf16.vlgmr.msra.gmra.mxu0 %v22_v29  ;;  %528 = vmatpush3.bf16.msra.mxu1 %v606_v34 }
  0x23   :  { %545 = vmatpush3.bf16.msra.mxu0 %v607_v36  ;;  %560 = vmatprep.mubr.msk.bf16.mxu0 %vm619_vm0, %v618_v35 }
  0x24   :  { %546 = vmatprep.subr.bf16.mxu0 %v618_v35 }
  0x27   :  { %547 = vmatpush3.bf16.msra.mxu0 %v608_v37 }
  0x28   :  { %548 = vmatprep.subr.bf16.mxu0 %v618_v35 }
  0x2b   :  { %549 = vmatpush3.bf16.msra.mxu0 %v609_v38 }
  0x2c   :  { %550 = vmatprep.subr.bf16.mxu0 %v618_v35 }
  0x2f   :  { %551 = vmatpush3.bf16.msra.mxu0 %v610_v39 }
  0x30   :  { %552 = vmatprep.subr.bf16.mxu0 %v618_v35 }
  0x33   :  { %553 = vmatpush3.bf16.msra.mxu0 %v611_v40 }
  0x34   :  { %554 = vmatprep.subr.bf16.mxu0 %v618_v35 }
  0x37   :  { %555 = vmatpush3.bf16.msra.mxu0 %v612_v58 }
  0x38   :  { %556 = vmatprep.subr.bf16.mxu0 %v618_v35 }
  0x3b   :  { %557 = vmatpush3.bf16.msra.mxu0 %v613_v59 }
  0x3c   :  { %558 = vmatprep.subr.bf16.mxu0 %v618_v35 }
  0x3f   :  { %559 = vmatpush3.bf16.msra.mxu0 %v614_v60 }
  0xe2   :  { %v167_v48 = vpop.f32.mrf.mxu0 }
  0xe3   :  { %v168_v49 = vadd.f32 %v167_v48, %v46_v46 }
  0xe4   :  { %v169_v50 = vpop.f32.mrf.mxu0 }
  0xe5   :  { %v170_v51 = vadd.f32 %v169_v50, %v50_v47  ;;  %v174_v52 = vmax.f32 %v168_v49, 0.0 }
  0xe6   :  { %v171_v53 = vpop.f32.mrf.mxu0 }
  0xe7   :  { %v175_v54 = vmax.f32 %v170_v51, 0.0  ;;  %v176_v57 = vpack.c.bf16 %v174_v52, %v174_v52 }
  0xe8   :  { %v172_v55 = vpop.f32.mrf.mxu0 }
  0xe9   :  { %v177_v56 = vpack.c.bf16 %v175_v54, %v175_v54 }
  0xeb   :  { %342 = vmatprep.mubr.bf16.mxu1 %v177_v56 }
  0xec   :  { %343 = vmatmul.mubr.bf16.vlgmr.msra.gmra.mxu1 %v176_v57 }
 0x1ac   :  { %v529_v61 = vpop.f32.mrf.mxu1 }
 0x1ae   :  { %v530_v63 = vpop.f32.mrf.mxu1 }
 0x1af   :  { %v531_v0 = vadd.f32 %v530_v63, %v529_v61 }
 0x1b0   :  { %v532_v1 = vpop.f32.mrf.mxu1 }
 0x1b1   :  { %v345_v2 = vadd.f32 %v531_v0, %v487_v62 }
 0x1b2   :  { %v533_v3 = vpop.f32.mrf.mxu1 }
 0x1b3   :  { %v350_v4 = vmax.f32 %v345_v2, 0.0 }
 0x1b5   :  { %v351_v5 = vpack.c.bf16 %v350_v4, %v350_v4 }
 0x1b7   :  { %561 = vmatmul.mubr.bf16.vlgmr.msra.gmra.mxu0 %v351_v5 }
 0x277   :  { %v454_v7 = vpop.f32.mrf.mxu0 }
 0x278   :  { %v455_v8 = vadd.f32 %v504_v6, %v454_v7 }
 0x279   :  { %v562_v9 = vpop.f32.mrf.mxu0 }
 0x27a   :  { %v460_v10 = vmul.f32 0.5, %v455_v8 }
 0x27b   :  { %v457_v11 = vpop.f32.mrf.mxu0 }
 0x27c   :  { %615 = vtanh.f32 %v460_v10 }
 0x27d   :  { %v563_v12 = vpop.f32.mrf.mxu0 }
 0x289   :  { %v616_v13 = vpop.eup %615 }
 0x28a   :  { %v462_v14 = vadd.f32 1.0, %v616_v13 }
 0x28c   :  { %v463_v15 = vmul.f32 0.5, %v462_v14 }
 0x28e   :  { %v464_v16 = vpack.c.bf16 %v463_v15, %v463_v15 }
 0x290   :  { %466 = vst.msk [vmem:[%s790_s5] sm:$0x1] %vm465_vm1, %v464_v16 }

</bundles_post_ra>
